<compile_context>
chip_gen: v7x
topology: tpu7x:2x2x1
jax: 0.10.0
libtpu: 0.0.40
codegen_flags: <defaults>
</compile_context>

<pallas_src>
import functools

import jax
import jax.numpy as jnp
from jax.experimental import pallas as pl
from jax.experimental.pallas import tpu as pltpu

_LANE = 128


def _dropout_kernel(seed_ref, x_ref, o_ref, *, threshold, scale, block_rows, cols):
    """One (block_rows, cols) tile of inverted dropout.

    keep  = hash(global_element_index, seed) < threshold   (threshold = (1-p)*2^32)
    out   = keep ? x * 1/(1-p) : 0
    """
    i = pl.program_id(0)

    shape = x_ref.shape  # (block_rows, cols)
    row = jax.lax.broadcasted_iota(jnp.int32, shape, 0).astype(jnp.uint32)
    col = jax.lax.broadcasted_iota(jnp.int32, shape, 1).astype(jnp.uint32)

    # Globally unique per-element counter -> independent mask per tile.
    row_g = row + (i * block_rows).astype(jnp.uint32)
    counter = row_g * jnp.uint32(cols) + col

    # Mix in the seed and hash (lowbias32-style avalanche). All ops are plain
    # 32-bit VPU integer ops (xor/shift/mul) — cheap and portable.
    s = seed_ref[0].astype(jnp.uint32)
    h = counter + s * jnp.uint32(0x9E3779B9)
    h = h ^ (h >> 16)
    h = h * jnp.uint32(0x7FEB352D)
    h = h ^ (h >> 15)
    h = h * jnp.uint32(0x846CA68B)
    h = h ^ (h >> 16)

    keep = h < jnp.uint32(threshold)

    xv = x_ref[...]  # stay in input dtype (no f32 round-trip)
    scale_c = jnp.asarray(scale, dtype=xv.dtype)
    o_ref[...] = jnp.where(keep, xv * scale_c, jnp.zeros_like(xv))


def dropout(x, seed, p=0.5, training=True):
    """Pallas implementation of the PyTorch Dropout module's forward."""
    if not training or p <= 0.0:
        return x
    if p >= 1.0:
        # Degenerate case: everything dropped (PyTorch's formula divides by 0).
        return jnp.zeros_like(x)

    orig_shape = x.shape
    n = x.size
    dtype = x.dtype

    # ---- Lane-dense 2D view: (rows, cols) with cols a multiple of 128 -------
    pad = (-n) % _LANE
    flat = x.reshape(-1)
    if pad:
        flat = jnp.pad(flat, (0, pad))
    total = flat.size
    cols = _LANE
    for c in (2048, 1024, 512, 256):
        if total % c == 0:
            cols = c
            break
    rows = total // cols
    x2 = flat.reshape(rows, cols)

    # ---- Tile size: ~2 MiB per buffer. With double-buffered input + output
    #      that is <= 8 MiB of VMEM, safe on v5e (16 MiB scoped default),
    #      v6e (32 MiB) and v7x (64 MiB physical). -----------------------------
    bytes_per_el = x2.dtype.itemsize
    target_bytes = 2 * 1024 * 1024
    if rows <= 8:
        tb = rows  # full-dim block (sublane dim smaller than 8 is allowed then)
    else:
        tb = min(rows, max(8, target_bytes // (cols * bytes_per_el)))
        tb = max(8, (tb // 8) * 8)
    grid = (pl.cdiv(rows, tb),)

    keep_prob = 1.0 - float(p)
    threshold = min(int(round(keep_prob * (1 << 32))), (1 << 32) - 1)
    scale = 1.0 / keep_prob

    seed_arr = jnp.asarray([seed], dtype=jnp.int32)

    kernel = functools.partial(
        _dropout_kernel,
        threshold=threshold,
        scale=scale,
        block_rows=tb,
        cols=cols,
    )

    out2 = pl.pallas_call(
        kernel,
        out_shape=jax.ShapeDtypeStruct((rows, cols), dtype),
        grid=grid,
        in_specs=[
            pl.BlockSpec(memory_space=pltpu.MemorySpace.SMEM),  # seed scalar
            pl.BlockSpec((tb, cols), lambda i: (i, 0)),         # streamed tiles
        ],
        out_specs=pl.BlockSpec((tb, cols), lambda i: (i, 0)),
        compiler_params=pltpu.CompilerParams(
            dimension_semantics=("parallel",),      # shard grid over v7x's 2 TCs
            vmem_limit_bytes=32 * 1024 * 1024,
        ),
    )(seed_arr, x2)

    out = out2.reshape(-1)
    if pad:
        out = out[:n]
    return out.reshape(orig_shape)


if __name__ == "__main__":
    key = jax.random.PRNGKey(0)
    batch, hidden = 8, 32
    x = jax.random.normal(key, (batch, hidden), dtype=jnp.float32)

    p = 0.5
    scale = 1.0 / (1.0 - p)

    # Training mode: each element is either dropped (exactly 0) or x / (1 - p).
    y = jax.block_until_ready(dropout(x, seed=1234, p=p, training=True))
    ok = jnp.all(jnp.isclose(y, 0.0) | jnp.isclose(y, x * scale, atol=1e-5))
    assert bool(ok), "dropout output is not {0, x/(1-p)} elementwise"

    # Eval mode is identity.
    y_eval = jax.block_until_ready(dropout(x, seed=1234, p=p, training=False))
    assert jnp.array_equal(y_eval, x)

    # Larger activation exercises the multi-tile grid path; drop fraction ~ p.
    x_big = jax.random.normal(jax.random.PRNGKey(1), (2048, 1024), dtype=jnp.float32)
    y_big = jax.block_until_ready(dropout(x_big, seed=7, p=p, training=True))
    ok_big = jnp.all(
        jnp.isclose(y_big, 0.0) | jnp.isclose(y_big, x_big * scale, atol=1e-5)
    )
    assert bool(ok_big)
    frac_dropped = float(jnp.mean((y_big == 0.0).astype(jnp.float32)))
    assert 0.45 < frac_dropped < 0.55, frac_dropped

    print("KERNEL_OK")
</pallas_src>

<mosaic_0001>
module attributes {stable_mosaic.version = 11 : i64} {
  func.func @_dropout_kernel(%arg0: i32, %arg1: memref<1xi32, #tpu.memory_space<smem>>, %arg2: memref<1x256xf32, #tpu.memory_space<vmem>>, %arg3: memref<1x256xf32, #tpu.memory_space<vmem>>) attributes {dimension_semantics = [#tpu.dimension_semantics<parallel>], iteration_bounds = array<i64: 1>, scalar_prefetch = 0 : i64, scratch_operands = 0 : i64, tpu.core_type = #tpu.core_type<tc>, window_params = [{transform_indices = @transform_0, window_bounds = array<i64: 1>}, {transform_indices = @transform_1, window_bounds = array<i64: 1, 256>}, {transform_indices = @transform_2, window_bounds = array<i64: 1, 256>}]} {
    %0 = tpu.iota {dimensions = array<i32: 0>} : vector<1x256xi32>
    %1 = tpu.iota {dimensions = array<i32: 1>} : vector<1x256xi32>
    %c1_i32 = arith.constant 1 : i32
    %2 = arith.muli %arg0, %c1_i32 : i32
    %3 = vector.broadcast %2 : i32 to vector<1x256xi32>
    %4 = arith.addi %0, %3 : vector<1x256xi32>
    %c256_i32 = arith.constant 256 : i32
    %5 = vector.broadcast %c256_i32 : i32 to vector<1x256xi32>
    %6 = arith.muli %4, %5 : vector<1x256xi32>
    %7 = arith.addi %6, %1 : vector<1x256xi32>
    %c0 = arith.constant 0 : index
    %8 = memref.load %arg1[%c0] : memref<1xi32, #tpu.memory_space<smem>>
    %c-1640531527_i32 = arith.constant -1640531527 : i32
    %9 = arith.muli %8, %c-1640531527_i32 : i32
    %10 = vector.broadcast %9 : i32 to vector<1x256xi32>
    %11 = arith.addi %7, %10 : vector<1x256xi32>
    %c16_i32 = arith.constant 16 : i32
    %12 = vector.broadcast %c16_i32 : i32 to vector<1x256xi32>
    %13 = arith.shrui %11, %12 : vector<1x256xi32>
    %14 = arith.xori %11, %13 : vector<1x256xi32>
    %c2146121005_i32 = arith.constant 2146121005 : i32
    %15 = vector.broadcast %c2146121005_i32 : i32 to vector<1x256xi32>
    %16 = arith.muli %14, %15 : vector<1x256xi32>
    %c15_i32 = arith.constant 15 : i32
    %17 = vector.broadcast %c15_i32 : i32 to vector<1x256xi32>
    %18 = arith.shrui %16, %17 : vector<1x256xi32>
    %19 = arith.xori %16, %18 : vector<1x256xi32>
    %c-2073254261_i32 = arith.constant -2073254261 : i32
    %20 = vector.broadcast %c-2073254261_i32 : i32 to vector<1x256xi32>
    %21 = arith.muli %19, %20 : vector<1x256xi32>
    %c16_i32_0 = arith.constant 16 : i32
    %22 = vector.broadcast %c16_i32_0 : i32 to vector<1x256xi32>
    %23 = arith.shrui %21, %22 : vector<1x256xi32>
    %24 = arith.xori %21, %23 : vector<1x256xi32>
    %c-2147483648_i32 = arith.constant -2147483648 : i32
    %25 = vector.broadcast %c-2147483648_i32 : i32 to vector<1x256xi32>
    %26 = arith.cmpi ult, %24, %25 : vector<1x256xi32>
    %c0_1 = arith.constant 0 : index
    %c0_2 = arith.constant 0 : index
    %27 = vector.load %arg2[%c0_1, %c0_2] : memref<1x256xf32, #tpu.memory_space<vmem>>, vector<1x256xf32>
    %cst = arith.constant 2.000000e+00 : f32
    %28 = vector.broadcast %cst : f32 to vector<1x256xf32>
    %29 = arith.mulf %27, %28 : vector<1x256xf32>
    %cst_3 = arith.constant 0.000000e+00 : f32
    %30 = vector.broadcast %cst_3 : f32 to vector<1x256xf32>
    %31 = arith.select %26, %29, %30 : vector<1x256xi1>, vector<1x256xf32>
    %c0_4 = arith.constant 0 : index
    %c0_5 = arith.constant 0 : index
    %32 = vector.load %arg3[%c0_4, %c0_5] : memref<1x256xf32, #tpu.memory_space<vmem>>, vector<1x256xf32>
    tpu.vector_store %arg3[%c0_4, %c0_5], %31 {strides = array<i32>} : memref<1x256xf32, #tpu.memory_space<vmem>>, vector<1x256xf32>,
    return
  }
  func.func @transform_0(%arg0: i32) -> i32 {
    %c0_i32 = arith.constant 0 : i32
    %c0_i32_0 = arith.constant 0 : i32
    return %c0_i32 : i32
  }
  func.func @transform_1(%arg0: i32) -> (i32, i32) {
    %c0_i32 = arith.constant 0 : i32
    %c0_i32_0 = arith.constant 0 : i32
    return %arg0, %c0_i32 : i32, i32
  }
  func.func @transform_2(%arg0: i32) -> (i32, i32) {
    %c0_i32 = arith.constant 0 : i32
    %c0_i32_0 = arith.constant 0 : i32
    return %arg0, %c0_i32 : i32, i32
  }
}

</mosaic_0001>

<bundles_post_ra>
// kernel: tpu_custom_call.1
= control target key start
LH: loop header
LB: loop body
LE: loop exit
PB: predicated region body
PF: predicated region fallthrough
CT: control target
= control target key end

     0   :  { %v13_v0 = vlaneseq  ;;  %s159_s0 = inlined_call_operand.<no memory space> [shape: s32[1], index: 0, kind: input, shape index: {}]   ;;  %s160_s1 = inlined_call_operand.vmem [shape: f32[1,256], index: 1, kind: input, shape index: {}]   ;;  %s161_s2 = inlined_call_operand.hbm [shape: f32[1,256], index: 2, kind: output, shape index: {}]  }
   0x1   :  { %s24_s11 = smul.u32 2654435769, %s159_s0 }
   0x2   :  { %8 = vsyncpa [#allocation4], 0  ;;  %v14_v1 = vshrl.u32 %v13_v0, 7  ;;  %v16_v2 = vand.u32 127, %v13_v0  ;;  %v46_v18 = vld [vmem:[%s160_s1] sm:$0x3] }
   0x3   :  { %v25_v5 = vstv %s24_s11  ;;  %v124_v21 = vmov 1966171168   ;;  %v47_v23 = vmul.f32 2.0, %v46_v18  ;;  %s125_s1 = smov [#allocation3]   ;;  %vm81_vm2 = vcmp.lt.s32.totalorder %v13_v0, 256 }
   0x4   :  { %v17_v3 = vadd.s32 128, %v16_v2  ;;  %v20_v4 = vmul.u32 256, %v14_v1  ;;  %v65_v22 = vunpack.c.l.s4 %v124_v21  ;;  %v51_v24 = vsub.s32 0, %v14_v1  ;;  %s90_s13 = sshll.u32 %s125_s1, 4  ;;  %s91_s13 = int_to_ptr.vmem [resolvable:$true] %s90_s13 }
   0x5   :  { %v55_v25 = vsub.s32 1, %v14_v1  ;;  %s100_s14 = scalar_lea.vmem %s91_s13, 32  ;;  %p105_p1 = scmp.lt.s32.totalorder %s91_s13, %s91_s13 }
   0x6   :  { %v21_v6 = vadd.s32 %v20_v4, %v16_v2  ;;  %v22_v7 = vadd.s32 %v20_v4, %v17_v3  ;;  %v66_v30 = vunpack.c.0.s8 %v65_v22  ;;  %v52_v31 = vrot.slane %v47_v23, %v51_v24  ;;  %p101_p0 = scmp.ne.s32.totalorder %s91_s13, %s100_s14  ;;  %p106_p2 = scmp.lt.s32.totalorder %s100_s14, %s100_s14 }
   0x7   :  { %v56_v32 = vrot.slane %v47_v23, %v55_v25 }
   0x8   :  { %v26_v8 = vadd.s32 %v25_v5, %v21_v6  ;;  %v27_v9 = vadd.s32 %v25_v5, %v22_v7  ;;  %v69_v35 = vsub.s32 %v66_v30, %v14_v1  ;;  %p107_p3 = por %p106_p2, %p105_p1 }
   0xa   :  { %v28_v10 = vshrl.u32 %v26_v8, 16  ;;  %v29_v11 = vshrl.u32 %v27_v9, 16  ;;  %p108_p4 = pnand %p107_p3, %p101_p0 }
   0xc   :  { %v30_v12 = vxor.u32 %v28_v10, %v26_v8  ;;  %v31_v13 = vxor.u32 %v29_v11, %v27_v9 }
   0xe   :  { %v32_v14 = vmul.u32 2146121005, %v30_v12  ;;  %v33_v15 = vmul.u32 2146121005, %v31_v13 }
  0x10   :  { %v34_v16 = vshrl.u32 %v32_v14, 15  ;;  %v35_v17 = vshrl.u32 %v33_v15, 15 }
  0x12   :  { %v36_v19 = vxor.u32 %v34_v16, %v32_v14  ;;  %v37_v20 = vxor.u32 %v35_v17, %v33_v15 }
  0x14   :  { %v38_v26 = vmul.u32 2221713035, %v36_v19  ;;  %v39_v27 = vmul.u32 2221713035, %v37_v20 }
  0x16   :  { %v40_v28 = vshrl.u32 %v38_v26, 16  ;;  %v41_v29 = vshrl.u32 %v39_v27, 16 }
  0x18   :  { %v42_v33 = vxor.u32 %v40_v28, %v38_v26  ;;  %v43_v34 = vxor.u32 %v41_v29, %v39_v27 }
  0x1a   :  { %vm44_vm0 = vcmp.lt.u32.totalorder %v42_v33, 2147483648  ;;  %vm45_vm1 = vcmp.lt.u32.totalorder %v43_v34, 2147483648 }
  0x1b   :  { %v59_v36 = vsel %vm44_vm0, %v52_v31, 0.0  ;;  %v60_v37 = vsel %vm45_vm1, %v56_v32, 0.0 }
  0x1c   :  { %v63_v38 = vcombine.low %v59_v36, %v60_v37 }
  0x1e   :  { %v70_v39 = vrot.slane %v63_v38, %v69_v35 }
  0x20   :  { %v77_v40 = vrot.slane %v70_v39, %v69_v35 }
  0x22   :  { %83 = vst.msk [vmem:[#allocation3] sm:$0x3] %vm81_vm2, %v77_v40 }
  0x23   :  { %111 = shalt.err (!%p108_p4)
}
  0x24   :  { %s112_s17 = scalar_lea.hbm %s161_s2, 32 }
  0x25   :  { %p113_p5 = scmp.ne.s32.totalorder %s161_s2, %s112_s17  ;;  %p116_p6 = scmp.lt.u32.totalorder %s112_s17, %s161_s2 }
  0x27   :  { %p118_p7 = pnand %p116_p6, %p113_p5 }
  0x29   :  { %121 = shalt.err (!%p118_p7)
}
  0x2a   :  { %93 = dma.vmem_to_hbm [thread:$0]  %s91_s13, 32, %s161_s2, [#allocation4]  }
  0x2b   :  { %122 = dma.done.wait [#allocation4], 32  }
  0x2c   :  { %123 = vsyncadd [#allocation4], 4294967264 }
  0x2d   :  { %97 = vsyncpa [#allocation4], 1 }

</bundles_post_ra>
